<compile_context>
chip_gen: v7x
topology: tpu7x:2x2x1
jax: 0.10.0
libtpu: 0.0.40
codegen_flags: <defaults>
</compile_context>

<pallas_src>
import functools

import jax
import jax.numpy as jnp
from jax import lax
from jax.experimental import pallas as pl
from jax.experimental.pallas import tpu as pltpu


def network_kernel(x_ref, eps_ref, w_ref, b_ref, out_ref):
    def mm(v, i):
        # fused linear layer i: (tb,128) @ (128,128) + (1,128) bias broadcast
        return jnp.dot(v, w_ref[i], preferred_element_type=jnp.float32) + b_ref[i:i + 1, :]

    x = x_ref[...]        # (tb,128): lanes 0..2 = x_str, 3..36 = x_ele
    eps = eps_ref[...]    # (tb,128): lanes 20..29 = eps1, 30..39 = eps2

    # --- encoders (str and ele block-diagonally fused) ---
    h1 = jnp.maximum(mm(x, 0), 0.0)    # lanes 0..4 str-hidden, 5..39 ele-hidden
    h = jnp.maximum(mm(h1, 1), 0.0)    # lanes 0..9 h_str, 10..19 h_ele

    # --- latent heads: one matmul produces [mu_s|mu_e|lv_s|lv_e] ---
    latent = mm(h, 2)                  # lanes 0..19 mu, 20..39 logvar, rest 0

    lane = lax.broadcasted_iota(jnp.int32, latent.shape, 1)
    is_lv = jnp.logical_and(lane >= 20, lane < 40)
    # lanes 0..19: mu ; lanes 20..39: exp(0.5*logvar)*eps ; rest: 0
    zsrc = jnp.where(is_lv, jnp.exp(0.5 * latent) * eps, latent)

    # --- predictor + z passthrough + decoder layer5, one fused matmul ---
    # (weight rows 20..39 duplicate rows 0..19 so the sigma*eps lanes add in,
    #  giving z = mu + sigma*eps implicitly inside the MXU)
    zout = mm(zsrc, 3)                 # lane 0 predict, 1..20 z, 64..103 dec-pre
    d = jnp.maximum(zout, 0.0)         # ReLU (only lanes 64..103 feed layer 4)

    # --- decoder layer7 writes sims directly at output lanes 21..57 ---
    sim = mm(d, 4)

    # compose the single lane-dense output slab
    out_ref[...] = sim + jnp.where(lane < 21, zout, 0.0)


def make_params(key):
    """Weights stored as (in, out) (i.e. transposed vs. torch's (out, in))."""
    def xavier(k, fi, fo):
        std = (2.0 / (fi + fo)) ** 0.5
        return jax.random.normal(k, (fi, fo), jnp.float32) * std

    dims = {
        "w1s": (3, 5), "w3s": (5, 10),
        "w1e": (34, 35), "w3e": (35, 10),
        "wmu": (10, 10), "wlv": (10, 10),
        "w5": (20, 1),
        "w5s": (10, 5), "w7s": (5, 4),
        "w5e": (10, 35), "w7e": (35, 33),
    }
    keys = jax.random.split(key, 2 * len(dims))
    params = {}
    for i, (name, (fi, fo)) in enumerate(dims.items()):
        params[name] = xavier(keys[2 * i], fi, fo)
        # non-zero biases so the correctness test exercises the bias path
        params["b" + name[1:]] = 0.1 * jax.random.normal(keys[2 * i + 1], (fo,), jnp.float32)
    return params


def pack_params(p):
    """Build the two fused VMEM slabs from per-layer parameters."""
    w = jnp.zeros((5, 128, 128), jnp.float32)
    b = jnp.zeros((8, 128), jnp.float32)

    # 0) encoder layer1 = blockdiag(w1s, w1e): lanes in 0..36 -> out 0..39
    w = w.at[0, 0:3, 0:5].set(p["w1s"])
    w = w.at[0, 3:37, 5:40].set(p["w1e"])
    b = b.at[0, 0:5].set(p["b1s"])
    b = b.at[0, 5:40].set(p["b1e"])

    # 1) encoder layer3 = blockdiag(w3s, w3e): 0..39 -> 0..19
    w = w.at[1, 0:5, 0:10].set(p["w3s"])
    w = w.at[1, 5:40, 10:20].set(p["w3e"])
    b = b.at[1, 0:10].set(p["b3s"])
    b = b.at[1, 10:20].set(p["b3e"])

    # 2) latent heads (z_mu_str / z_logvar_str reused for BOTH branches, as in
    #    the PyTorch source): 0..19 -> [mu_s|mu_e|lv_s|lv_e] = 0..39
    w = w.at[2, 0:10, 0:10].set(p["wmu"])
    w = w.at[2, 10:20, 10:20].set(p["wmu"])
    w = w.at[2, 0:10, 20:30].set(p["wlv"])
    w = w.at[2, 10:20, 30:40].set(p["wlv"])
    b = b.at[2, 0:10].set(p["bmu"])
    b = b.at[2, 10:20].set(p["bmu"])
    b = b.at[2, 20:30].set(p["blv"])
    b = b.at[2, 30:40].set(p["blv"])

    # 3) predictor (col 0) + z passthrough (cols 1..20) + decoder layer5
    #    (cols 64..103).  Rows 20..39 duplicate rows 0..19 so that the
    #    sigma*eps lanes (20..39 of zsrc) contribute exactly like mu lanes.
    base = jnp.zeros((20, 128), jnp.float32)
    base = base.at[0:20, 0:1].set(p["w5"])
    base = base.at[0:20, 1:21].set(jnp.eye(20, dtype=jnp.float32))
    base = base.at[0:10, 64:69].set(p["w5s"])
    base = base.at[10:20, 69:104].set(p["w5e"])
    w = w.at[3, 0:20].set(base)
    w = w.at[3, 20:40].set(base)
    b = b.at[3, 0:1].set(p["b5"])
    b = b.at[3, 64:69].set(p["b5s"])
    b = b.at[3, 69:104].set(p["b5e"])

    # 4) decoder layer7 = blockdiag(w7s, w7e), writing directly to the output
    #    lane positions 21..24 (sim_str) and 25..57 (sim_ele)
    w = w.at[4, 64:69, 21:25].set(p["w7s"])
    w = w.at[4, 69:104, 25:58].set(p["w7e"])
    b = b.at[4, 21:25].set(p["b7s"])
    b = b.at[4, 25:58].set(p["b7e"])

    return w, b


@functools.partial(jax.jit, static_argnames=("block_b",))
def network_forward(x, eps1, eps2, p, *, block_b=512):
    B = x.shape[0]
    w_slab, b_slab = pack_params(p)

    # batch tiling: multiple of 8 sublanes; parallel grid axis (uses both TCs
    # on v7x when B is large).  For the toy B=8 this is a single grid step.
    tb = min(block_b, max(8, ((B + 7) // 8) * 8))
    Bp = ((B + tb - 1) // tb) * tb
    grid = (Bp // tb,)

    x_pad = jnp.zeros((Bp, 128), jnp.float32).at[:B, 0:37].set(x)
    eps_pad = (jnp.zeros((Bp, 128), jnp.float32)
               .at[:B, 20:30].set(eps1)
               .at[:B, 30:40].set(eps2))

    out = pl.pallas_call(
        network_kernel,
        out_shape=jax.ShapeDtypeStruct((Bp, 128), jnp.float32),
        grid_spec=pltpu.PrefetchScalarGridSpec(
            num_scalar_prefetch=0,
            grid=grid,
            in_specs=[
                pl.BlockSpec((tb, 128), lambda i: (i, 0)),         # x slab
                pl.BlockSpec((tb, 128), lambda i: (i, 0)),         # eps slab
                pl.BlockSpec((5, 128, 128), lambda i: (0, 0, 0)),  # weights (resident)
                pl.BlockSpec((8, 128), lambda i: (0, 0)),          # biases (resident)
            ],
            out_specs=pl.BlockSpec((tb, 128), lambda i: (i, 0)),
        ),
        compiler_params=pltpu.CompilerParams(
            dimension_semantics=("parallel",)),
    )(x_pad, eps_pad, w_slab, b_slab)

    predict = out[:B, 0:1]
    z_str = out[:B, 1:11]
    z_ele = out[:B, 11:21]
    simu_x = out[:B, 21:58]
    return predict, z_str, z_ele, simu_x


def reference_forward(x, eps1, eps2, p):
    """Pure-JAX reference mirroring the PyTorch forward (incl. the head-reuse quirk)."""
    relu = lambda v: jnp.maximum(v, 0.0)
    x_str, x_ele = x[:, :3], x[:, 3:]
    h_s = relu(relu(x_str @ p["w1s"] + p["b1s"]) @ p["w3s"] + p["b3s"])
    h_e = relu(relu(x_ele @ p["w1e"] + p["b1e"]) @ p["w3e"] + p["b3e"])
    z_s = (h_s @ p["wmu"] + p["bmu"]) + jnp.exp(0.5 * (h_s @ p["wlv"] + p["blv"])) * eps1
    z_e = (h_e @ p["wmu"] + p["bmu"]) + jnp.exp(0.5 * (h_e @ p["wlv"] + p["blv"])) * eps2
    predict = jnp.concatenate([z_s, z_e], axis=1) @ p["w5"] + p["b5"]
    sim_s = relu(z_s @ p["w5s"] + p["b5s"]) @ p["w7s"] + p["b7s"]
    sim_e = relu(z_e @ p["w5e"] + p["b5e"]) @ p["w7e"] + p["b7e"]
    return predict, z_s, z_e, jnp.concatenate([sim_s, sim_e], axis=1)


if __name__ == "__main__":
    B = 8
    FEAT = 37  # 3 "str" features + 34 "ele" features

    root = jax.random.PRNGKey(0)
    k_x, k_p, k_e1, k_e2 = jax.random.split(root, 4)

    x = jax.random.normal(k_x, (B, FEAT), jnp.float32)
    params = make_params(k_p)
    # eps ~ N(0,1) mirrors torch.randn_like inside reparameterization
    eps1 = jax.random.normal(k_e1, (B, 10), jnp.float32)
    eps2 = jax.random.normal(k_e2, (B, 10), jnp.float32)

    outs = network_forward(x, eps1, eps2, params)
    outs = jax.block_until_ready(outs)

    refs = reference_forward(x, eps1, eps2, params)
    for o, r in zip(outs, refs):
        assert o.shape == r.shape, (o.shape, r.shape)
        assert float(jnp.max(jnp.abs(o - r))) < 1e-3, "mismatch vs JAX reference"

    print("KERNEL_OK")
</pallas_src>

<mosaic_0001>
module attributes {stable_mosaic.version = 11 : i64} {
  func.func @network_kernel(%arg0: i32, %arg1: memref<8x128xf32, #tpu.memory_space<vmem>>, %arg2: memref<8x128xf32, #tpu.memory_space<vmem>>, %arg3: memref<5x128x128xf32, #tpu.memory_space<vmem>>, %arg4: memref<8x128xf32, #tpu.memory_space<vmem>>, %arg5: memref<8x128xf32, #tpu.memory_space<vmem>>) attributes {dimension_semantics = [#tpu.dimension_semantics<parallel>], iteration_bounds = array<i64: 1>, scalar_prefetch = 0 : i64, scratch_operands = 0 : i64, tpu.core_type = #tpu.core_type<tc>, window_params = [{transform_indices = @transform_0, window_bounds = array<i64: 8, 128>}, {transform_indices = @transform_1, window_bounds = array<i64: 8, 128>}, {pipeline_mode = #tpu.pipeline_mode<synchronous>, transform_indices = @transform_2, window_bounds = array<i64: 5, 128, 128>}, {pipeline_mode = #tpu.pipeline_mode<synchronous>, transform_indices = @transform_3, window_bounds = array<i64: 8, 128>}, {transform_indices = @transform_4, window_bounds = array<i64: 8, 128>}]} {
    %c0 = arith.constant 0 : index
    %c0_0 = arith.constant 0 : index
    %0 = vector.load %arg1[%c0, %c0_0] : memref<8x128xf32, #tpu.memory_space<vmem>>, vector<8x128xf32>
    %c0_1 = arith.constant 0 : index
    %c0_2 = arith.constant 0 : index
    %1 = vector.load %arg2[%c0_1, %c0_2] : memref<8x128xf32, #tpu.memory_space<vmem>>, vector<8x128xf32>
    %c0_3 = arith.constant 0 : index
    %c0_4 = arith.constant 0 : index
    %c0_5 = arith.constant 0 : index
    %2 = vector.load %arg3[%c0_3, %c0_4, %c0_5] : memref<5x128x128xf32, #tpu.memory_space<vmem>>, vector<1x128x128xf32>
    %3 = vector.shape_cast %2 : vector<1x128x128xf32> to vector<128x128xf32>
    %cst = arith.constant dense<0.000000e+00> : vector<8x128xf32>
    %4 = tpu.matmul %0, %3, %cst {dimension_numbers = #tpu.dot_dimension_numbers<[1], [0], [0], [1], [0, 0, 1, 1], [], []>} : vector<8x128xf32>, vector<128x128xf32>, vector<8x128xf32> -> vector<8x128xf32>
    %c0_6 = arith.constant 0 : index
    %c0_7 = arith.constant 0 : index
    %5 = vector.load %arg4[%c0_6, %c0_7] : memref<8x128xf32, #tpu.memory_space<vmem>>, vector<1x128xf32>
    %6 = vector.broadcast %5 : vector<1x128xf32> to vector<8x128xf32>
    %7 = arith.addf %4, %6 : vector<8x128xf32>
    %cst_8 = arith.constant 0.000000e+00 : f32
    %8 = vector.broadcast %cst_8 : f32 to vector<8x128xf32>
    %9 = arith.maximumf %7, %8 : vector<8x128xf32>
    %c1 = arith.constant 1 : index
    %c0_9 = arith.constant 0 : index
    %c0_10 = arith.constant 0 : index
    %10 = vector.load %arg3[%c1, %c0_9, %c0_10] : memref<5x128x128xf32, #tpu.memory_space<vmem>>, vector<1x128x128xf32>
    %11 = vector.shape_cast %10 : vector<1x128x128xf32> to vector<128x128xf32>
    %cst_11 = arith.constant dense<0.000000e+00> : vector<8x128xf32>
    %12 = tpu.matmul %9, %11, %cst_11 {dimension_numbers = #tpu.dot_dimension_numbers<[1], [0], [0], [1], [0, 0, 1, 1], [], []>} : vector<8x128xf32>, vector<128x128xf32>, vector<8x128xf32> -> vector<8x128xf32>
    %c1_12 = arith.constant 1 : index
    %c0_13 = arith.constant 0 : index
    %13 = vector.load %arg4[%c1_12, %c0_13] : memref<8x128xf32, #tpu.memory_space<vmem>>, vector<1x128xf32>
    %14 = vector.broadcast %13 : vector<1x128xf32> to vector<8x128xf32>
    %15 = arith.addf %12, %14 : vector<8x128xf32>
    %cst_14 = arith.constant 0.000000e+00 : f32
    %16 = vector.broadcast %cst_14 : f32 to vector<8x128xf32>
    %17 = arith.maximumf %15, %16 : vector<8x128xf32>
    %c2 = arith.constant 2 : index
    %c0_15 = arith.constant 0 : index
    %c0_16 = arith.constant 0 : index
    %18 = vector.load %arg3[%c2, %c0_15, %c0_16] : memref<5x128x128xf32, #tpu.memory_space<vmem>>, vector<1x128x128xf32>
    %19 = vector.shape_cast %18 : vector<1x128x128xf32> to vector<128x128xf32>
    %cst_17 = arith.constant dense<0.000000e+00> : vector<8x128xf32>
    %20 = tpu.matmul %17, %19, %cst_17 {dimension_numbers = #tpu.dot_dimension_numbers<[1], [0], [0], [1], [0, 0, 1, 1], [], []>} : vector<8x128xf32>, vector<128x128xf32>, vector<8x128xf32> -> vector<8x128xf32>
    %c2_18 = arith.constant 2 : index
    %c0_19 = arith.constant 0 : index
    %21 = vector.load %arg4[%c2_18, %c0_19] : memref<8x128xf32, #tpu.memory_space<vmem>>, vector<1x128xf32>
    %22 = vector.broadcast %21 : vector<1x128xf32> to vector<8x128xf32>
    %23 = arith.addf %20, %22 : vector<8x128xf32>
    %24 = tpu.iota {dimensions = array<i32: 1>} : vector<8x128xi32>
    %c20_i32 = arith.constant 20 : i32
    %25 = vector.broadcast %c20_i32 : i32 to vector<8x128xi32>
    %26 = arith.cmpi sge, %24, %25 : vector<8x128xi32>
    %c40_i32 = arith.constant 40 : i32
    %27 = vector.broadcast %c40_i32 : i32 to vector<8x128xi32>
    %28 = arith.cmpi slt, %24, %27 : vector<8x128xi32>
    %29 = arith.andi %26, %28 : vector<8x128xi1>
    %cst_20 = arith.constant 5.000000e-01 : f32
    %30 = vector.broadcast %cst_20 : f32 to vector<8x128xf32>
    %31 = arith.mulf %30, %23 : vector<8x128xf32>
    %32 = math.exp %31 : vector<8x128xf32>
    %33 = arith.mulf %32, %1 : vector<8x128xf32>
    %34 = arith.select %29, %33, %23 : vector<8x128xi1>, vector<8x128xf32>
    %c3 = arith.constant 3 : index
    %c0_21 = arith.constant 0 : index
    %c0_22 = arith.constant 0 : index
    %35 = vector.load %arg3[%c3, %c0_21, %c0_22] : memref<5x128x128xf32, #tpu.memory_space<vmem>>, vector<1x128x128xf32>
    %36 = vector.shape_cast %35 : vector<1x128x128xf32> to vector<128x128xf32>
    %cst_23 = arith.constant dense<0.000000e+00> : vector<8x128xf32>
    %37 = tpu.matmul %34, %36, %cst_23 {dimension_numbers = #tpu.dot_dimension_numbers<[1], [0], [0], [1], [0, 0, 1, 1], [], []>} : vector<8x128xf32>, vector<128x128xf32>, vector<8x128xf32> -> vector<8x128xf32>
    %c3_24 = arith.constant 3 : index
    %c0_25 = arith.constant 0 : index
    %38 = vector.load %arg4[%c3_24, %c0_25] : memref<8x128xf32, #tpu.memory_space<vmem>>, vector<1x128xf32>
    %39 = vector.broadcast %38 : vector<1x128xf32> to vector<8x128xf32>
    %40 = arith.addf %37, %39 : vector<8x128xf32>
    %cst_26 = arith.constant 0.000000e+00 : f32
    %41 = vector.broadcast %cst_26 : f32 to vector<8x128xf32>
    %42 = arith.maximumf %40, %41 : vector<8x128xf32>
    %c4 = arith.constant 4 : index
    %c0_27 = arith.constant 0 : index
    %c0_28 = arith.constant 0 : index
    %43 = vector.load %arg3[%c4, %c0_27, %c0_28] : memref<5x128x128xf32, #tpu.memory_space<vmem>>, vector<1x128x128xf32>
    %44 = vector.shape_cast %43 : vector<1x128x128xf32> to vector<128x128xf32>
    %cst_29 = arith.constant dense<0.000000e+00> : vector<8x128xf32>
    %45 = tpu.matmul %42, %44, %cst_29 {dimension_numbers = #tpu.dot_dimension_numbers<[1], [0], [0], [1], [0, 0, 1, 1], [], []>} : vector<8x128xf32>, vector<128x128xf32>, vector<8x128xf32> -> vector<8x128xf32>
    %c4_30 = arith.constant 4 : index
    %c0_31 = arith.constant 0 : index
    %46 = vector.load %arg4[%c4_30, %c0_31] : memref<8x128xf32, #tpu.memory_space<vmem>>, vector<1x128xf32>
    %47 = vector.broadcast %46 : vector<1x128xf32> to vector<8x128xf32>
    %48 = arith.addf %45, %47 : vector<8x128xf32>
    %c21_i32 = arith.constant 21 : i32
    %49 = vector.broadcast %c21_i32 : i32 to vector<8x128xi32>
    %50 = arith.cmpi slt, %24, %49 : vector<8x128xi32>
    %cst_32 = arith.constant 0.000000e+00 : f32
    %51 = vector.broadcast %cst_32 : f32 to vector<8x128xf32>
    %52 = arith.select %50, %40, %51 : vector<8x128xi1>, vector<8x128xf32>
    %53 = arith.addf %48, %52 : vector<8x128xf32>
    %c0_33 = arith.constant 0 : index
    %c0_34 = arith.constant 0 : index
    %54 = vector.load %arg5[%c0_33, %c0_34] : memref<8x128xf32, #tpu.memory_space<vmem>>, vector<8x128xf32>
    tpu.vector_store %arg5[%c0_33, %c0_34], %53 {strides = array<i32>} : memref<8x128xf32, #tpu.memory_space<vmem>>, vector<8x128xf32>,
    return
  }
  func.func @transform_0(%arg0: i32) -> (i32, i32) {
    %c0_i32 = arith.constant 0 : i32
    %c0_i32_0 = arith.constant 0 : i32
    return %arg0, %c0_i32 : i32, i32
  }
  func.func @transform_1(%arg0: i32) -> (i32, i32) {
    %c0_i32 = arith.constant 0 : i32
    %c0_i32_0 = arith.constant 0 : i32
    return %arg0, %c0_i32 : i32, i32
  }
  func.func @transform_2(%arg0: i32) -> (i32, i32, i32) {
    %c0_i32 = arith.constant 0 : i32
    %c0_i32_0 = arith.constant 0 : i32
    %c0_i32_1 = arith.constant 0 : i32
    %c0_i32_2 = arith.constant 0 : i32
    return %c0_i32, %c0_i32_0, %c0_i32_1 : i32, i32, i32
  }
  func.func @transform_3(%arg0: i32) -> (i32, i32) {
    %c0_i32 = arith.constant 0 : i32
    %c0_i32_0 = arith.constant 0 : i32
    %c0_i32_1 = arith.constant 0 : i32
    return %c0_i32, %c0_i32_0 : i32, i32
  }
  func.func @transform_4(%arg0: i32) -> (i32, i32) {
    %c0_i32 = arith.constant 0 : i32
    %c0_i32_0 = arith.constant 0 : i32
    return %arg0, %c0_i32 : i32, i32
  }
}

</mosaic_0001>

<bundles_post_ra>
// kernel: network_forward.1
= control target key start
LH: loop header
LB: loop body
LE: loop exit
PB: predicated region body
PF: predicated region fallthrough
CT: control target
= control target key end

     0   :  { %v953_v0 = vmov 0.0|0.0   ;;  %vm954_vm0 = vmmov 0   ;;  %v955_v4 = vmov 0.0   ;;  %s1295_s2 = inlined_call_operand.vmem [shape: f32[5,128,128], index: 2, kind: input, shape index: {}]   ;;  %s1296_s0 = inlined_call_operand.vmem [shape: f32[8,128], index: 0, kind: input, shape index: {}]   ;;  %s1297_s3 = inlined_call_operand.vmem [shape: f32[8,128], index: 3, kind: input, shape index: {}]   ;;  %s1298_s1 = inlined_call_operand.vmem [shape: f32[8,128], index: 1, kind: input, shape index: {}]   ;;  %s1299_s4 = inlined_call_operand.vmem [shape: f32[8,128], index: 4, kind: output, shape index: {}]  }
   0x1   :  { %828 = vmatprep.subr.bf16.mxu0 %v953_v0  ;;  %v19_v1 = vld [vmem:[%s1295_s2] sm:$0xff]  ;;  %v20_v2 = vld [vmem:[%s1295_s2 + $0x8] sm:$0xff]  ;;  %v21_v3 = vld [vmem:[%s1295_s2 + $0x10] sm:$0xff]  ;;  %685 = vmatprep.mubr.msk.f32.mxu0 %vm954_vm0, %v955_v4 }
   0x2   :  { %v829_v5 = vpack.c.bf16 %v20_v2, %v19_v1  ;;  %v22_v6 = vld [vmem:[%s1295_s2 + $0x18] sm:$0xff]  ;;  %852 = vmatprep.subr.bf16.mxu1 %v953_v0  ;;  %720 = vmatprep.mubr.msk.f32.mxu1 %vm954_vm0, %v955_v4  ;;  %v23_v8 = vld [vmem:[%s1295_s2 + $0x20] sm:$0xff]  ;;  %v24_v9 = vld [vmem:[%s1295_s2 + $0x28] sm:$0xff] }
   0x3   :  { %v832_v7 = vpack.c.bf16 %v22_v6, %v21_v3  ;;  %v500_v10 = vld [vmem:[%s1295_s2 + $0x80] sm:$0xff]  ;;  %v501_v11 = vld [vmem:[%s1295_s2 + $0x88] sm:$0xff]  ;;  %v502_v12 = vld [vmem:[%s1295_s2 + $0x90] sm:$0xff]  ;;  %v835_v14 = vpack.c.bf16 %v24_v9, %v23_v8 }
   0x4   :  { %830 = vmatpush3.bf16.msra.mxu0 %v829_v5  ;;  %v503_v13 = vld [vmem:[%s1295_s2 + $0x98] sm:$0xff]  ;;  %v853_v15 = vpack.c.bf16 %v501_v11, %v500_v10  ;;  %v25_v16 = vld [vmem:[%s1295_s2 + $0x30] sm:$0xff]  ;;  %v504_v19 = vld [vmem:[%s1295_s2 + $0xa0] sm:$0xff] }
   0x5   :  { %831 = vmatprep.subr.bf16.mxu0 %v953_v0  ;;  %v26_v17 = vld [vmem:[%s1295_s2 + $0x38] sm:$0xff]  ;;  %v856_v18 = vpack.c.bf16 %v503_v13, %v502_v12  ;;  %v505_v20 = vld [vmem:[%s1295_s2 + $0xa8] sm:$0xff]  ;;  %v27_v22 = vld [vmem:[%s1295_s2 + $0x40] sm:$0xff] }
   0x6   :  { %854 = vmatpush3.bf16.msra.mxu1 %v853_v15  ;;  %v838_v21 = vpack.c.bf16 %v26_v17, %v25_v16  ;;  %v28_v23 = vld [vmem:[%s1295_s2 + $0x48] sm:$0xff]  ;;  %v859_v24 = vpack.c.bf16 %v505_v20, %v504_v19  ;;  %v506_v25 = vld [vmem:[%s1295_s2 + $0xb0] sm:$0xff]  ;;  %v507_v26 = vld [vmem:[%s1295_s2 + $0xb8] sm:$0xff] }
   0x7   :  { %855 = vmatprep.subr.bf16.mxu1 %v953_v0  ;;  %v841_v27 = vpack.c.bf16 %v28_v23, %v27_v22  ;;  %v29_v28 = vld [vmem:[%s1295_s2 + $0x50] sm:$0xff]  ;;  %v30_v29 = vld [vmem:[%s1295_s2 + $0x58] sm:$0xff]  ;;  %v862_v30 = vpack.c.bf16 %v507_v26, %v506_v25  ;;  %v508_v31 = vld [vmem:[%s1295_s2 + $0xc0] sm:$0xff] }
   0x8   :  { %833 = vmatpush3.bf16.msra.mxu0 %v832_v7  ;;  %v509_v32 = vld [vmem:[%s1295_s2 + $0xc8] sm:$0xff]  ;;  %v844_v33 = vpack.c.bf16 %v30_v29, %v29_v28  ;;  %v31_v34 = vld [vmem:[%s1295_s2 + $0x60] sm:$0xff]  ;;  %v510_v37 = vld [vmem:[%s1295_s2 + $0xd0] sm:$0xff] }
   0x9   :  { %834 = vmatprep.subr.bf16.mxu0 %v953_v0  ;;  %v32_v35 = vld [vmem:[%s1295_s2 + $0x68] sm:$0xff]  ;;  %v865_v36 = vpack.c.bf16 %v509_v32, %v508_v31  ;;  %v511_v38 = vld [vmem:[%s1295_s2 + $0xd8] sm:$0xff]  ;;  %v33_v40 = vld [vmem:[%s1295_s2 + $0x70] sm:$0xff] }
   0xa   :  { %857 = vmatpush3.bf16.msra.mxu1 %v856_v18  ;;  %v847_v39 = vpack.c.bf16 %v32_v35, %v31_v34  ;;  %v34_v41 = vld [vmem:[%s1295_s2 + $0x78] sm:$0xff]  ;;  %v868_v42 = vpack.c.bf16 %v511_v38, %v510_v37  ;;  %v512_v43 = vld [vmem:[%s1295_s2 + $0xe0] sm:$0xff]  ;;  %v513_v44 = vld [vmem:[%s1295_s2 + $0xe8] sm:$0xff] }
   0xb   :  { %858 = vmatprep.subr.bf16.mxu1 %v953_v0  ;;  %v850_v45 = vpack.c.bf16 %v34_v41, %v33_v40  ;;  %v871_v46 = vpack.c.bf16 %v513_v44, %v512_v43  ;;  %v17_v47 = vld [vmem:[%s1296_s0] sm:$0xff]  ;;  %v514_v48 = vld [vmem:[%s1295_s2 + $0xf0] sm:$0xff]  ;;  %v515_v49 = vld [vmem:[%s1295_s2 + $0xf8] sm:$0xff] }
   0xc   :  { %836 = vmatpush3.bf16.msra.mxu0 %v835_v14  ;;  %v874_v50 = vpack.c.bf16 %v515_v49, %v514_v48  ;;  %v517_v51 = vld [vmem:[%s1295_s2 + $0x100] sm:$0xff]  ;;  %v518_v52 = vld [vmem:[%s1295_s2 + $0x108] sm:$0xff]  ;;  %v519_v53 = vld [vmem:[%s1295_s2 + $0x110] sm:$0xff] }
   0xd   :  { %837 = vmatprep.subr.bf16.mxu0 %v953_v0  ;;  %v877_v54 = vpack.c.bf16 %v518_v52, %v517_v51  ;;  %v520_v55 = vld [vmem:[%s1295_s2 + $0x118] sm:$0xff]  ;;  %v521_v57 = vld [vmem:[%s1295_s2 + $0x120] sm:$0xff]  ;;  %v522_v58 = vld [vmem:[%s1295_s2 + $0x128] sm:$0xff] }
   0xe   :  { %860 = vmatpush3.bf16.msra.mxu1 %v859_v24  ;;  %v880_v56 = vpack.c.bf16 %v520_v55, %v519_v53  ;;  %v883_v59 = vpack.c.bf16 %v522_v58, %v521_v57  ;;  %v523_v60 = vld [vmem:[%s1295_s2 + $0x130] sm:$0xff]  ;;  %v524_v61 = vld [vmem:[%s1295_s2 + $0x138] sm:$0xff]  ;;  %v525_v63 = vld [vmem:[%s1295_s2 + $0x140] sm:$0xff] }
   0xf   :  { %861 = vmatprep.subr.bf16.mxu1 %v953_v0  ;;  %v886_v62 = vpack.c.bf16 %v524_v61, %v523_v60  ;;  %v526_v1 = vld [vmem:[%s1295_s2 + $0x148] sm:$0xff]  ;;  %v527_v3 = vld [vmem:[%s1295_s2 + $0x150] sm:$0xff]  ;;  %v528_v5 = vld [vmem:[%s1295_s2 + $0x158] sm:$0xff] }
  0x10   :  { %839 = vmatpush3.bf16.msra.mxu0 %v838_v21  ;;  %v889_v2 = vpack.c.bf16 %v526_v1, %v525_v63  ;;  %v892_v6 = vpack.c.bf16 %v528_v5, %v527_v3  ;;  %v529_v7 = vld [vmem:[%s1295_s2 + $0x160] sm:$0xff]  ;;  %v530_v8 = vld [vmem:[%s1295_s2 + $0x168] sm:$0xff]  ;;  %v531_v15 = vld [vmem:[%s1295_s2 + $0x170] sm:$0xff] }
  0x11   :  { %840 = vmatprep.subr.bf16.mxu0 %v953_v0  ;;  %v895_v9 = vpack.c.bf16 %v530_v8, %v529_v7  ;;  %v499_v10 = vld [vmem:[%s1297_s3] ss:$0 sm:$0xff]  ;;  %v532_v16 = vld [vmem:[%s1295_s2 + $0x178] sm:$0xff]  ;;  %v535_v19 = vld [vmem:[%s1295_s2 + $0x188] sm:$0xff] }
  0x12   :  { %863 = vmatpush3.bf16.msra.mxu1 %v862_v30  ;;  %v898_v17 = vpack.c.bf16 %v532_v16, %v531_v15  ;;  %v534_v18 = vld [vmem:[%s1295_s2 + $0x180] sm:$0xff]  ;;  %v536_v20 = vld [vmem:[%s1295_s2 + $0x190] sm:$0xff]  ;;  %v537_v22 = vld [vmem:[%s1295_s2 + $0x198] sm:$0xff] }
  0x13   :  { %864 = vmatprep.subr.bf16.mxu1 %v953_v0  ;;  %v901_v21 = vpack.c.bf16 %v535_v19, %v534_v18  ;;  %v904_v23 = vpack.c.bf16 %v537_v22, %v536_v20  ;;  %v538_v24 = vld [vmem:[%s1295_s2 + $0x1a0] sm:$0xff]  ;;  %v539_v25 = vld [vmem:[%s1295_s2 + $0x1a8] sm:$0xff]  ;;  %v540_v32 = vld [vmem:[%s1295_s2 + $0x1b0] sm:$0xff] }
  0x14   :  { %842 = vmatpush3.bf16.msra.mxu0 %v841_v27  ;;  %v907_v26 = vpack.c.bf16 %v539_v25, %v538_v24  ;;  %v516_v27 = vld [vmem:[%s1297_s3 + $0x1] ss:$0 sm:$0xff]  ;;  %v544_v37 = vld [vmem:[%s1295_s2 + $0x1d0] sm:$0xff]  ;;  %v545_v38 = vld [vmem:[%s1295_s2 + $0x1d8] sm:$0xff] }
  0x15   :  { %843 = vmatprep.subr.bf16.mxu0 %v953_v0  ;;  %v542_v35 = vld [vmem:[%s1295_s2 + $0x1c0] sm:$0xff]  ;;  %v916_v40 = vpack.c.bf16 %v545_v38, %v544_v37  ;;  %v547_v41 = vld [vmem:[%s1295_s2 + $0x1e8] sm:$0xff]  ;;  %v548_v43 = vld [vmem:[%s1295_s2 + $0x1f0] sm:$0xff] }
  0x16   :  { %866 = vmatpush3.bf16.msra.mxu1 %v865_v36  ;;  %v549_v44 = vld [vmem:[%s1295_s2 + $0x1f8] sm:$0xff]  ;;  %v553_v48 = vld [vmem:[%s1295_s2 + $0x210] sm:$0xff]  ;;  %v555_v52 = vld [vmem:[%s1295_s2 + $0x220] sm:$0xff] }
  0x17   :  { %867 = vmatprep.subr.bf16.mxu1 %v953_v0  ;;  %v556_v53 = vld [vmem:[%s1295_s2 + $0x228] sm:$0xff]  ;;  %v557_v55 = vld [vmem:[%s1295_s2 + $0x230] sm:$0xff]  ;;  %v559_v58 = vld [vmem:[%s1295_s2 + $0x240] sm:$0xff] }
  0x18   :  { %845 = vmatpush3.bf16.msra.mxu0 %v844_v33  ;;  %v541_v33 = vld [vmem:[%s1295_s2 + $0x1b8] sm:$0xff]  ;;  %v561_v61 = vld [vmem:[%s1295_s2 + $0x250] sm:$0xff]  ;;  %v563_v1 = vld [vmem:[%s1295_s2 + $0x260] sm:$0xff] }
  0x19   :  { %846 = vmatprep.subr.bf16.mxu0 %v953_v0  ;;  %v910_v34 = vpack.c.bf16 %v541_v33, %v540_v32  ;;  %v533_v5 = vld [vmem:[%s1297_s3 + $0x2] ss:$0 sm:$0xff]  ;;  %v565_v16 = vld [vmem:[%s1295_s2 + $0x270] sm:$0xff]  ;;  %v550_v19 = vld [vmem:[%s1297_s3 + $0x3] ss:$0 sm:$0xff] }
  0x1a   :  { %869 = vmatpush3.bf16.msra.mxu1 %v868_v42  ;;  %v567_v24 = vld [vmem:[%s1297_s3 + $0x4] ss:$0 sm:$0xff] }
  0x1b   :  { %870 = vmatprep.subr.bf16.mxu1 %v953_v0 }
  0x1c   :  { %848 = vmatpush3.bf16.msra.mxu0 %v847_v39  ;;  %v546_v39 = vld [vmem:[%s1295_s2 + $0x1e0] sm:$0xff] }
  0x1d   :  { %849 = vmatprep.subr.bf16.mxu0 %v953_v0  ;;  %v919_v42 = vpack.c.bf16 %v547_v41, %v546_v39 }
  0x1e   :  { %872 = vmatpush3.bf16.msra.mxu1 %v871_v46  ;;  %v551_v46 = vld [vmem:[%s1295_s2 + $0x200] sm:$0xff] }
  0x1f   :  { %873 = vmatprep.subr.bf16.mxu1 %v953_v0 }
  0x20   :  { %851 = vmatpush3.bf16.msra.mxu0 %v850_v45  ;;  %v922_v45 = vpack.c.bf16 %v549_v44, %v548_v43 }
  0x21   :  { %876 = vmatprep.subr.bf16.mxu0 %v953_v0 }
  0x22   :  { %875 = vmatpush3.bf16.msra.mxu1 %v874_v50  ;;  %v554_v50 = vld [vmem:[%s1295_s2 + $0x218] sm:$0xff] }
  0x23   :  { %686 = vmatmul.mubr.f32.vlgmr.msra.gmra.mrb[0].mxu0 %v17_v47  ;;  %900 = vmatprep.subr.bf16.mxu1 %v953_v0  ;;  %v552_v47 = vld [vmem:[%s1295_s2 + $0x208] sm:$0xff]  ;;  %v928_v51 = vpack.c.bf16 %v554_v50, %v553_v48 }
  0x24   :  { %755 = vmatprep.mubr.msk.f32.mxu0 %vm954_vm0, %v955_v4  ;;  %878 = vmatpush3.bf16.msra.mxu0 %v877_v54  ;;  %v925_v49 = vpack.c.bf16 %v552_v47, %v551_v46  ;;  %v931_v54 = vpack.c.bf16 %v556_v53, %v555_v52 }
  0x25   :  { %879 = vmatprep.subr.bf16.mxu0 %v953_v0 }
  0x28   :  { %881 = vmatpush3.bf16.msra.mxu0 %v880_v56  ;;  %v558_v56 = vld [vmem:[%s1295_s2 + $0x238] sm:$0xff] }
  0x29   :  { %882 = vmatprep.subr.bf16.mxu0 %v953_v0  ;;  %v934_v57 = vpack.c.bf16 %v558_v56, %v557_v55 }
  0x2c   :  { %884 = vmatpush3.bf16.msra.mxu0 %v883_v59  ;;  %v560_v59 = vld [vmem:[%s1295_s2 + $0x248] sm:$0xff] }
  0x2d   :  { %885 = vmatprep.subr.bf16.mxu0 %v953_v0  ;;  %v937_v60 = vpack.c.bf16 %v560_v59, %v559_v58 }
  0x30   :  { %887 = vmatpush3.bf16.msra.mxu0 %v886_v62  ;;  %v562_v62 = vld [vmem:[%s1295_s2 + $0x258] sm:$0xff] }
  0x31   :  { %888 = vmatprep.subr.bf16.mxu0 %v953_v0  ;;  %v940_v63 = vpack.c.bf16 %v562_v62, %v561_v61 }
  0x34   :  { %890 = vmatpush3.bf16.msra.mxu0 %v889_v2  ;;  %v564_v2 = vld [vmem:[%s1295_s2 + $0x268] sm:$0xff] }
  0x35   :  { %891 = vmatprep.subr.bf16.mxu0 %v953_v0  ;;  %v943_v3 = vpack.c.bf16 %v564_v2, %v563_v1 }
  0x38   :  { %893 = vmatpush3.bf16.msra.mxu0 %v892_v6 }
  0x39   :  { %894 = vmatprep.subr.bf16.mxu0 %v953_v0 }
  0x3c   :  { %896 = vmatpush3.bf16.msra.mxu0 %v895_v9 }
  0x3d   :  { %897 = vmatprep.subr.bf16.mxu0 %v953_v0 }
  0x40   :  { %899 = vmatpush3.bf16.msra.mxu0 %v898_v17  ;;  %v566_v17 = vld [vmem:[%s1295_s2 + $0x278] sm:$0xff] }
  0x41   :  { %924 = vmatprep.subr.bf16.mxu0 %v953_v0  ;;  %v946_v18 = vpack.c.bf16 %v566_v17, %v565_v16 }
  0xf6   :  { %v106_v11 = vpop.f32.mrb[0].mxu0 }
  0xf7   :  { %v107_v12 = vadd.f32 %v499_v10, %v106_v11  ;;  %v687_v13 = vpop.f32.mrb[1].mxu0  ;;  %v296_v11 = vlaneseq }
  0xf8   :  { %v18_v13 = vld [vmem:[%s1298_s1] sm:$0xff] }
  0xf9   :  { %v110_v14 = vmax.f32 %v107_v12, 0.0  ;;  %v297_v12 = vand.u32 127, %v296_v11 }
  0xfb   :  { %721 = vmatmul.mubr.f32.vlgmr.msra.gmra.mrb[0].mxu1 %v110_v14  ;;  %vm298_vm1 = vcmp.ge.s32.totalorder %v297_v12, 20  ;;  %vm299_vm2 = vcmp.lt.s32.totalorder %v297_v12, 40  ;;  %vm491_vm4 = vcmp.lt.s32.totalorder %v297_v12, 21 }
  0xfc   :  { %790 = vmatprep.mubr.msk.f32.mxu1 %vm954_vm0, %v955_v4  ;;  %902 = vmatpush3.bf16.msra.mxu1 %v901_v21  ;;  %vm300_vm3 = vmand %vm298_vm1, %vm299_vm2 }
  0xfd   :  { %903 = vmatprep.subr.bf16.mxu1 %v953_v0 }
 0x100   :  { %905 = vmatpush3.bf16.msra.mxu1 %v904_v23 }
 0x101   :  { %906 = vmatprep.subr.bf16.mxu1 %v953_v0 }
 0x104   :  { %908 = vmatpush3.bf16.msra.mxu1 %v907_v26 }
 0x105   :  { %909 = vmatprep.subr.bf16.mxu1 %v953_v0 }
 0x108   :  { %911 = vmatpush3.bf16.msra.mxu1 %v910_v34 }
 0x109   :  { %912 = vmatprep.subr.bf16.mxu1 %v953_v0 }
 0x1ce   :  { %v199_v28 = vpop.f32.mrb[0].mxu1 }
 0x1cf   :  { %v200_v29 = vadd.f32 %v516_v27, %v199_v28  ;;  %v722_v30 = vpop.f32.mrb[1].mxu1 }
 0x1d1   :  { %v203_v31 = vmax.f32 %v200_v29, 0.0 }
 0x1d3   :  { %756 = vmatmul.mubr.f32.vlgmr.msra.gmra.mrb[2].mxu0 %v203_v31 }
 0x1d4   :  { %825 = vmatprep.mubr.msk.f32.mxu0 %vm954_vm0, %v955_v4  ;;  %v543_v4 = vld [vmem:[%s1295_s2 + $0x1c8] sm:$0xff]  ;;  %926 = vmatpush3.bf16.msra.mxu0 %v925_v49 }
 0x1d5   :  { %v913_v36 = vpack.c.bf16 %v543_v4, %v542_v35  ;;  %927 = vmatprep.subr.bf16.mxu0 %v953_v0 }
 0x1d7   :  { %914 = vmatpush3.bf16.msra.mxu1 %v913_v36 }
 0x1d8   :  { %915 = vmatprep.subr.bf16.mxu1 %v953_v0  ;;  %929 = vmatpush3.bf16.msra.mxu0 %v928_v51 }
 0x1d9   :  { %930 = vmatprep.subr.bf16.mxu0 %v953_v0 }
 0x1db   :  { %917 = vmatpush3.bf16.msra.mxu1 %v916_v40 }
 0x1dc   :  { %918 = vmatprep.subr.bf16.mxu1 %v953_v0  ;;  %932 = vmatpush3.bf16.msra.mxu0 %v931_v54 }
 0x1dd   :  { %933 = vmatprep.subr.bf16.mxu0 %v953_v0 }
 0x1df   :  { %920 = vmatpush3.bf16.msra.mxu1 %v919_v42 }
 0x1e0   :  { %921 = vmatprep.subr.bf16.mxu1 %v953_v0  ;;  %935 = vmatpush3.bf16.msra.mxu0 %v934_v57 }
 0x1e1   :  { %936 = vmatprep.subr.bf16.mxu0 %v953_v0 }
 0x1e3   :  { %923 = vmatpush3.bf16.msra.mxu1 %v922_v45 }
 0x1e4   :  { %938 = vmatpush3.bf16.msra.mxu0 %v937_v60 }
 0x1e5   :  { %939 = vmatprep.subr.bf16.mxu0 %v953_v0 }
 0x1e8   :  { %941 = vmatpush3.bf16.msra.mxu0 %v940_v63 }
 0x1e9   :  { %942 = vmatprep.subr.bf16.mxu0 %v953_v0 }
 0x1ec   :  { %944 = vmatpush3.bf16.msra.mxu0 %v943_v3 }
 0x1ed   :  { %945 = vmatprep.subr.bf16.mxu0 %v953_v0 }
 0x1f0   :  { %947 = vmatpush3.bf16.msra.mxu0 %v946_v18 }
 0x2a6   :  { %v292_v6 = vpop.f32.mrb[2].mxu0 }
 0x2a7   :  { %v293_v7 = vadd.f32 %v533_v5, %v292_v6  ;;  %v757_v8 = vpop.f32.mrb[3].mxu0 }
 0x2a9   :  { %v301_v9 = vmul.f32 0.5, %v293_v7 }
 0x2ab   :  { %v302_v10 = vmul.f32 1.442695, %v301_v9 }
 0x2ad   :  { %951 = vpow2.f32 %v302_v10 }
 0x2b7   :  { %v952_v14 = vpop.eup %951 }
 0x2b8   :  { %v304_v0 = vmul.f32 %v952_v14, %v18_v13 }
 0x2ba   :  { %v305_v15 = vsel %vm300_vm3, %v304_v0, %v293_v7 }
 0x2bb   :  { %791 = vmatmul.mubr.f32.vlgmr.msra.gmra.mrb[2].mxu1 %v305_v15 }
 0x38e   :  { %v394_v20 = vpop.f32.mrb[2].mxu1 }
 0x38f   :  { %v395_v21 = vadd.f32 %v550_v19, %v394_v20  ;;  %v792_v22 = vpop.f32.mrb[3].mxu1 }
 0x391   :  { %v398_v23 = vmax.f32 %v395_v21, 0.0  ;;  %v492_v28 = vsel %vm491_vm4, %v395_v21, 0.0 }
 0x393   :  { %826 = vmatmul.mubr.f32.vlgmr.msra.gmra.mrb[4].mxu0 %v398_v23 }
 0x466   :  { %v487_v25 = vpop.f32.mrb[4].mxu0 }
 0x467   :  { %v488_v26 = vadd.f32 %v567_v24, %v487_v25  ;;  %v827_v27 = vpop.f32.mrb[5].mxu0 }
 0x469   :  { %v493_v29 = vadd.f32 %v492_v28, %v488_v26 }
 0x46b   :  { %494 = vst [vmem:[%s1299_s4] sm:$0xff] %v493_v29 }

</bundles_post_ra>
